<compile_context>
chip_gen: v7x
topology: tpu7x:2x2x1
jax: 0.10.0
libtpu: 0.0.40
codegen_flags: <defaults>
</compile_context>

<pallas_src>
import math

import jax
import jax.numpy as jnp
from jax.experimental import pallas as pl
from jax.experimental.pallas import tpu as pltpu


def _pair(v):
    if isinstance(v, int):
        return (v, v)
    v = tuple(v)
    return (v[0], v[0]) if len(v) == 1 else (v[0], v[1])


def _same_pad(size, k, s):
    out = math.ceil(size / s)
    extra = (out - 1) * s - size + k
    if extra < 0:
        # TODO(synk): kernel_size < stride would need negative padding (crop),
        # as F.pad does with negative pads; hybridnets only uses (3, 2).
        raise NotImplementedError("negative SAME padding not supported")
    lo = extra // 2
    return out, lo, extra - lo


def _ds(start, size, stride):
    return pl.ds(start, size) if stride == 1 else pl.ds(start, size, stride)


def _pick_channel_block(C, per_channel_elems, itemsize, budget=12 << 20):
    """Largest lane-aligned channel block whose VMEM footprint fits `budget`."""
    if C % 128 == 0:
        for cb in (512, 256, 128):
            if C % cb == 0 and cb * per_channel_elems * itemsize <= budget:
                return cb
        return 128
    return C   # a block equal to the full channel dim is always legal


def maxpool2d_static_same_padding_nhwc(x, kernel_size, stride):
    """Channel-last (NHWC) TF-SAME max pool as a single Pallas TPU kernel."""
    # TODO(synk): non-default nn.MaxPool2d options (dilation, ceil_mode,
    # return_indices, explicit padding) are unsupported; hybridnets uses (3, 2).
    KH, KW = _pair(kernel_size)
    SH, SW = _pair(stride)
    N, H, W, C = x.shape
    Ho, pt, pb = _same_pad(H, KH, SH)
    Wo, pL, pR = _same_pad(W, KW, SW)
    Hp, Wp = H + pt + pb, W + pL + pR
    pad_h = bool(pt or pb)
    dtype = x.dtype
    itemsize = jnp.dtype(dtype).itemsize

    # Per-channel VMEM elements: double-buffered input + output blocks plus the
    # two padding/staging scratches.
    per_channel = 2 * H * W + 2 * Ho * Wo + (Hp * W if pad_h else 0) + Ho * Wp
    Cb = _pick_channel_block(C, per_channel, itemsize)
    grid = (N, C // Cb)
    # TODO(synk): feature maps so large that H*W*Cb exceeds the VMEM budget
    # would need an H-tiled grid with a (KH-1) halo; BiFPN shapes never hit it.

    def kernel(x_ref, o_ref, *scratch):
        if pad_h:
            hpad_ref, wpad_ref = scratch
            # H padding lives on a leading dim: zero only the thin top/bottom
            # strips, then drop the input at row offset pt (pure addressing,
            # no sublane shift, no concatenates).
            if pt:
                hpad_ref[:, 0:pt, :, :] = jnp.zeros((1, pt, W, Cb), dtype)
            if pb:
                hpad_ref[:, pt + H:Hp, :, :] = jnp.zeros((1, pb, W, Cb), dtype)
            hpad_ref[:, pt:pt + H, :, :] = x_ref[...]
            src = hpad_ref
        else:
            (wpad_ref,) = scratch
            src = x_ref

        # Pass 1: reduce the KH taps along H (leading-dim strided ref reads).
        hmax = src[:, _ds(0, Ho, SH), :, :]
        for kh in range(1, KH):
            hmax = jnp.maximum(hmax, src[:, _ds(kh, Ho, SH), :, :])

        # Pass 2: W padding + reduce the KW taps along W (sublane-strided).
        # Only the already H-reduced rows get restaged, and they only shift by
        # pL sublanes when the left pad is nonzero.
        if pL:
            wpad_ref[:, :, 0:pL, :] = jnp.zeros((1, Ho, pL, Cb), dtype)
        if pR:
            wpad_ref[:, :, pL + W:Wp, :] = jnp.zeros((1, Ho, pR, Cb), dtype)
        wpad_ref[:, :, pL:pL + W, :] = hmax

        out = wpad_ref[:, :, _ds(0, Wo, SW), :]
        for kw in range(1, KW):
            out = jnp.maximum(out, wpad_ref[:, :, _ds(kw, Wo, SW), :])
        o_ref[...] = out                   # (1, Ho, Wo, Cb), lane-dense in C

    scratch_shapes = [pltpu.VMEM((1, Ho, Wp, Cb), dtype)]
    if pad_h:
        scratch_shapes = [pltpu.VMEM((1, Hp, W, Cb), dtype)] + scratch_shapes

    return pl.pallas_call(
        kernel,
        out_shape=jax.ShapeDtypeStruct((N, Ho, Wo, C), dtype),
        grid_spec=pltpu.PrefetchScalarGridSpec(
            num_scalar_prefetch=0,
            grid=grid,
            in_specs=[pl.BlockSpec((1, H, W, Cb), lambda n, c: (n, 0, 0, c))],
            out_specs=pl.BlockSpec((1, Ho, Wo, Cb), lambda n, c: (n, 0, 0, c)),
            scratch_shapes=scratch_shapes,
        ),
        compiler_params=pltpu.CompilerParams(
            dimension_semantics=("parallel", "parallel")),
    )(x)


def maxpool2d_static_same_padding(x_nchw, kernel_size, stride):
    """PyTorch-layout (NCHW) entry point matching the module's forward()."""
    # Pooling is channel-independent, so run the kernel channel-last (C on the
    # lanes) and do the layout conversion with XLA transposes outside.  In a
    # full network you would keep activations NHWC end-to-end and skip these.
    x_nhwc = jnp.transpose(x_nchw, (0, 2, 3, 1))
    y = maxpool2d_static_same_padding_nhwc(x_nhwc, kernel_size, stride)
    return jnp.transpose(y, (0, 3, 1, 2))


def _reference_maxpool_nchw(x, kernel_size, stride):
    """Pure-JAX reference reproducing F.pad(value=0) + nn.MaxPool2d."""
    KH, KW = _pair(kernel_size)
    SH, SW = _pair(stride)
    H, W = x.shape[-2:]
    _, pt, pb = _same_pad(H, KH, SH)
    _, pL, pR = _same_pad(W, KW, SW)
    xp = jnp.pad(x, ((0, 0), (0, 0), (pt, pb), (pL, pR)))
    init = jnp.array(-jnp.inf, x.dtype)
    return jax.lax.reduce_window(xp, init, jax.lax.max,
                                 (1, 1, KH, KW), (1, 1, SH, SW), "VALID")


if __name__ == "__main__":
    # hybridnets / EfficientDet BiFPN usage: MaxPool2dStaticSamePadding(3, 2).
    kernel_size, stride = 3, 2
    N, C, H, W = 2, 128, 16, 17    # even H + odd W exercises both SAME parities
    key = jax.random.PRNGKey(0)
    x = jax.random.normal(key, (N, C, H, W), jnp.float32)

    pool = jax.jit(lambda a: maxpool2d_static_same_padding(a, kernel_size, stride))
    y = jax.block_until_ready(pool(x))

    y_ref = _reference_maxpool_nchw(x, kernel_size, stride)
    assert y.shape == y_ref.shape == (N, C, 8, 9), (y.shape, y_ref.shape)
    assert bool(jnp.all(jnp.isfinite(y)))
    assert bool(jnp.allclose(y, y_ref)), float(jnp.max(jnp.abs(y - y_ref)))
    print("KERNEL_OK")
</pallas_src>

<mosaic_0001>
module attributes {stable_mosaic.version = 11 : i64} {
  func.func @kernel(%arg0: i32, %arg1: i32, %arg2: memref<1x16x17x128xf32, #tpu.memory_space<vmem>>, %arg3: memref<1x8x9x128xf32, #tpu.memory_space<vmem>>, %arg4: memref<1x17x17x128xf32, #tpu.memory_space<vmem>>, %arg5: memref<1x8x19x128xf32, #tpu.memory_space<vmem>>) attributes {dimension_semantics = [#tpu.dimension_semantics<parallel>, #tpu.dimension_semantics<parallel>], iteration_bounds = array<i64: 2, 1>, scalar_prefetch = 0 : i64, scratch_operands = 2 : i64, tpu.core_type = #tpu.core_type<tc>, window_params = [{transform_indices = @transform_0, window_bounds = array<i64: 1, 16, 17, 128>}, {transform_indices = @transform_1, window_bounds = array<i64: 1, 8, 9, 128>}]} {
    %cst = arith.constant 0.000000e+00 : f32
    %0 = vector.broadcast %cst : f32 to vector<1x1x17x128xf32>
    %c0 = arith.constant 0 : index
    %c16 = arith.constant 16 : index
    %c0_0 = arith.constant 0 : index
    %c0_1 = arith.constant 0 : index
    %1 = vector.load %arg4[%c0, %c16, %c0_0, %c0_1] : memref<1x17x17x128xf32, #tpu.memory_space<vmem>>, vector<1x1x17x128xf32>
    tpu.vector_store %arg4[%c0, %c16, %c0_0, %c0_1], %0 {strides = array<i32>} : memref<1x17x17x128xf32, #tpu.memory_space<vmem>>, vector<1x1x17x128xf32>,
    %c0_2 = arith.constant 0 : index
    %c0_3 = arith.constant 0 : index
    %c0_4 = arith.constant 0 : index
    %c0_5 = arith.constant 0 : index
    %2 = vector.load %arg2[%c0_2, %c0_3, %c0_4, %c0_5] : memref<1x16x17x128xf32, #tpu.memory_space<vmem>>, vector<1x16x17x128xf32>
    %c0_6 = arith.constant 0 : index
    %c0_7 = arith.constant 0 : index
    %c0_8 = arith.constant 0 : index
    %c0_9 = arith.constant 0 : index
    %3 = vector.load %arg4[%c0_6, %c0_7, %c0_8, %c0_9] : memref<1x17x17x128xf32, #tpu.memory_space<vmem>>, vector<1x16x17x128xf32>
    tpu.vector_store %arg4[%c0_6, %c0_7, %c0_8, %c0_9], %2 {strides = array<i32>} : memref<1x17x17x128xf32, #tpu.memory_space<vmem>>, vector<1x16x17x128xf32>,
    %c0_10 = arith.constant 0 : index
    %c0_11 = arith.constant 0 : index
    %c0_12 = arith.constant 0 : index
    %c0_13 = arith.constant 0 : index
    %4 = tpu.strided_load %arg4[%c0_10, %c0_11, %c0_12, %c0_13] {strides = array<i32: 1, 2, 1, 1>} : memref<1x17x17x128xf32, #tpu.memory_space<vmem>>, vector<1x8x17x128xf32>
    %c0_14 = arith.constant 0 : index
    %c1 = arith.constant 1 : index
    %c0_15 = arith.constant 0 : index
    %c0_16 = arith.constant 0 : index
    %5 = tpu.strided_load %arg4[%c0_14, %c1, %c0_15, %c0_16] {strides = array<i32: 1, 2, 1, 1>} : memref<1x17x17x128xf32, #tpu.memory_space<vmem>>, vector<1x8x17x128xf32>
    %6 = arith.maximumf %4, %5 : vector<1x8x17x128xf32>
    %c0_17 = arith.constant 0 : index
    %c2 = arith.constant 2 : index
    %c0_18 = arith.constant 0 : index
    %c0_19 = arith.constant 0 : index
    %7 = tpu.strided_load %arg4[%c0_17, %c2, %c0_18, %c0_19] {strides = array<i32: 1, 2, 1, 1>} : memref<1x17x17x128xf32, #tpu.memory_space<vmem>>, vector<1x8x17x128xf32>
    %8 = arith.maximumf %6, %7 : vector<1x8x17x128xf32>
    %cst_20 = arith.constant 0.000000e+00 : f32
    %9 = vector.broadcast %cst_20 : f32 to vector<1x8x1x128xf32>
    %c0_21 = arith.constant 0 : index
    %c0_22 = arith.constant 0 : index
    %c0_23 = arith.constant 0 : index
    %c0_24 = arith.constant 0 : index
    %10 = vector.load %arg5[%c0_21, %c0_22, %c0_23, %c0_24] : memref<1x8x19x128xf32, #tpu.memory_space<vmem>>, vector<1x8x1x128xf32>
    tpu.vector_store %arg5[%c0_21, %c0_22, %c0_23, %c0_24], %9 {strides = array<i32>} : memref<1x8x19x128xf32, #tpu.memory_space<vmem>>, vector<1x8x1x128xf32>,
    %cst_25 = arith.constant 0.000000e+00 : f32
    %11 = vector.broadcast %cst_25 : f32 to vector<1x8x1x128xf32>
    %c0_26 = arith.constant 0 : index
    %c0_27 = arith.constant 0 : index
    %c18 = arith.constant 18 : index
    %c0_28 = arith.constant 0 : index
    %12 = vector.load %arg5[%c0_26, %c0_27, %c18, %c0_28] : memref<1x8x19x128xf32, #tpu.memory_space<vmem>>, vector<1x8x1x128xf32>
    tpu.vector_store %arg5[%c0_26, %c0_27, %c18, %c0_28], %11 {strides = array<i32>} : memref<1x8x19x128xf32, #tpu.memory_space<vmem>>, vector<1x8x1x128xf32>,
    %c0_29 = arith.constant 0 : index
    %c0_30 = arith.constant 0 : index
    %c1_31 = arith.constant 1 : index
    %c0_32 = arith.constant 0 : index
    %13 = vector.load %arg5[%c0_29, %c0_30, %c1_31, %c0_32] : memref<1x8x19x128xf32, #tpu.memory_space<vmem>>, vector<1x8x17x128xf32>
    tpu.vector_store %arg5[%c0_29, %c0_30, %c1_31, %c0_32], %8 {strides = array<i32>} : memref<1x8x19x128xf32, #tpu.memory_space<vmem>>, vector<1x8x17x128xf32>,
    %c0_33 = arith.constant 0 : index
    %c0_34 = arith.constant 0 : index
    %c0_35 = arith.constant 0 : index
    %c0_36 = arith.constant 0 : index
    %14 = tpu.strided_load %arg5[%c0_33, %c0_34, %c0_35, %c0_36] {strides = array<i32: 1, 1, 2, 1>} : memref<1x8x19x128xf32, #tpu.memory_space<vmem>>, vector<1x8x9x128xf32>
    %c0_37 = arith.constant 0 : index
    %c0_38 = arith.constant 0 : index
    %c1_39 = arith.constant 1 : index
    %c0_40 = arith.constant 0 : index
    %15 = tpu.strided_load %arg5[%c0_37, %c0_38, %c1_39, %c0_40] {strides = array<i32: 1, 1, 2, 1>} : memref<1x8x19x128xf32, #tpu.memory_space<vmem>>, vector<1x8x9x128xf32>
    %16 = arith.maximumf %14, %15 : vector<1x8x9x128xf32>
    %c0_41 = arith.constant 0 : index
    %c0_42 = arith.constant 0 : index
    %c2_43 = arith.constant 2 : index
    %c0_44 = arith.constant 0 : index
    %17 = tpu.strided_load %arg5[%c0_41, %c0_42, %c2_43, %c0_44] {strides = array<i32: 1, 1, 2, 1>} : memref<1x8x19x128xf32, #tpu.memory_space<vmem>>, vector<1x8x9x128xf32>
    %18 = arith.maximumf %16, %17 : vector<1x8x9x128xf32>
    %c0_45 = arith.constant 0 : index
    %c0_46 = arith.constant 0 : index
    %c0_47 = arith.constant 0 : index
    %c0_48 = arith.constant 0 : index
    %19 = vector.load %arg3[%c0_45, %c0_46, %c0_47, %c0_48] : memref<1x8x9x128xf32, #tpu.memory_space<vmem>>, vector<1x8x9x128xf32>
    tpu.vector_store %arg3[%c0_45, %c0_46, %c0_47, %c0_48], %18 {strides = array<i32>} : memref<1x8x9x128xf32, #tpu.memory_space<vmem>>, vector<1x8x9x128xf32>,
    return
  }
  func.func @transform_0(%arg0: i32, %arg1: i32) -> (i32, i32, i32, i32) {
    %c0_i32 = arith.constant 0 : i32
    %c0_i32_0 = arith.constant 0 : i32
    %c0_i32_1 = arith.constant 0 : i32
    return %arg0, %c0_i32, %c0_i32_0, %arg1 : i32, i32, i32, i32
  }
  func.func @transform_1(%arg0: i32, %arg1: i32) -> (i32, i32, i32, i32) {
    %c0_i32 = arith.constant 0 : i32
    %c0_i32_0 = arith.constant 0 : i32
    %c0_i32_1 = arith.constant 0 : i32
    return %arg0, %c0_i32, %c0_i32_0, %arg1 : i32, i32, i32, i32
  }
}

</mosaic_0001>

<bundles_post_ra>
// kernel: _lambda_.1
= control target key start
LH: loop header
LB: loop body
LE: loop exit
PB: predicated region body
PF: predicated region fallthrough
CT: control target
= control target key end

     0   :  { %s708_s6 = smov 0   ;;  %s710_s7 = smov 0   ;;  %s816_s0 = inlined_call_operand.vmem [shape: f32[2,16,17,128], index: 0, kind: input, shape index: {}]   ;;  %s817_s1 = inlined_call_operand.vmem [shape: f32[2,8,9,128], index: 1, kind: output, shape index: {}]  }
   0x1   :  { %s712_s8 = smov 0  }
   0x2 LB: > { %s23_s9 = sadd.s32 1, %s691_s7  ;;  %p640_p0 = scmp.ge.s32.totalorder %s695_s8, 1  ;;  %s695_s8 = sphi %s712_s8, %s11_s8   ;;  %s691_s7 = sphi %s710_s7, %s819_s7   ;;  %s687_s6 = sphi %s708_s6, %s818_s6  }
   0x3   : > { %p25_p1 = scmp.ge.s32.totalorder %s23_s9, 2  ;;  %p106_p2 = scmp.lt.s32.totalorder %s695_s8, 3 }
   0x5   : > { %s821_s9 = smov (%p25_p1, %s23_s9), 0  ;;  %p107_p3 = pnand %p640_p0, %p106_p2 }
   0x6   : > { %p132_p4 = scmp.lt.s32.totalorder (!%p107_p3), %s687_s6, 1  ;;  %v697_v0 = vmov (!%p107_p3), 0.0  }
   0x7   : > { %110 = sbr.rel (%p107_p3) target bundleno = 78 (0x4e), region = 24  ;;  %151 = vst [vmem:[#allocation2 + $0x190] sm:$0x1] (!%p107_p3), %v697_v0  ;;  %370 = vst [vmem:[#allocation3] sm:$0x1] (!%p107_p3), %v697_v0 }
   0x8   : > { %371 = vst [vmem:[#allocation3 + $0x18] sm:$0x1] (!%p107_p3), %v697_v0  ;;  %372 = vst [vmem:[#allocation3 + $0x30] sm:$0x1] (!%p107_p3), %v697_v0 }
   0x9   : > { %373 = vst [vmem:[#allocation3 + $0x48] sm:$0x1] (!%p107_p3), %v697_v0  ;;  %374 = vst [vmem:[#allocation3 + $0x60] sm:$0x1] (!%p107_p3), %v697_v0 }
   0xa   : > { %375 = vst [vmem:[#allocation3 + $0x78] sm:$0x1] (!%p107_p3), %v697_v0  ;;  %376 = vst [vmem:[#allocation3 + $0x90] sm:$0x1] (!%p107_p3), %v697_v0 }
   0xb   : > { %377 = vst [vmem:[#allocation3 + $0xa8] sm:$0x1] (!%p107_p3), %v697_v0  ;;  %378 = vst [vmem:[#allocation3 + $0x12] sm:$0x1] (!%p107_p3), %v697_v0 }
   0xc   : > { %379 = vst [vmem:[#allocation3 + $0x2a] sm:$0x1] (!%p107_p3), %v697_v0  ;;  %380 = vst [vmem:[#allocation3 + $0x42] sm:$0x1] (!%p107_p3), %v697_v0 }
   0xd   : > { %381 = vst [vmem:[#allocation3 + $0x5a] sm:$0x1] (!%p107_p3), %v697_v0  ;;  %382 = vst [vmem:[#allocation3 + $0x72] sm:$0x1] (!%p107_p3), %v697_v0 }
   0xe   : > { %383 = vst [vmem:[#allocation3 + $0x8a] sm:$0x1] %v697_v0  ;;  %384 = vst [vmem:[#allocation3 + $0xa2] sm:$0x1] %v697_v0  ;;  %s823_s6 = smov (!%p132_p4, %s687_s6), 1 }
   0xf   : > { %385 = vst [vmem:[#allocation3 + $0xba] sm:$0x1] %v697_v0  ;;  %s647_s10 = smul.u32 384, %s823_s6  ;;  %s646_s14 = sshll.u32 %s823_s6, 7 }
  0x10   : > { %s789_s17 = scalar_lea.vmem %s817_s1, %s646_s14 }
  0x11   : > { %s733_s13 = scalar_lea.vmem %s816_s0, %s647_s10 }
  0x12   : > { %v152_v1 = vld [vmem:[%s733_s13] sm:$0xff]  ;;  %v153_v2 = vld [vmem:[%s733_s13 + $0x8] sm:$0xff]  ;;  %v154_v3 = vld [vmem:[%s733_s13 + $0x10] sm:$0x1] }
  0x13   : > { %202 = vst [vmem:[#allocation2 + $0x10] sm:$0x1] %v154_v3  ;;  %v155_v4 = vld [vmem:[%s733_s13 + $0x18] sm:$0xff]  ;;  %v156_v5 = vld [vmem:[%s733_s13 + $0x20] sm:$0xff]  ;;  %v157_v6 = vld [vmem:[%s733_s13 + $0x28] sm:$0x1] }
  0x14   : > { %205 = vst [vmem:[#allocation2 + $0x28] sm:$0x1] %v157_v6  ;;  %v158_v7 = vld [vmem:[%s733_s13 + $0x30] sm:$0xff]  ;;  %v159_v8 = vld [vmem:[%s733_s13 + $0x38] sm:$0xff]  ;;  %v160_v9 = vld [vmem:[%s733_s13 + $0x40] sm:$0x1]  ;;  %v297_v10 = vmax.f32 %v152_v1, %v155_v4  ;;  %v298_v11 = vmax.f32 %v153_v2, %v156_v5 }
  0x15   : > { %208 = vst [vmem:[#allocation2 + $0x40] sm:$0x1] %v160_v9  ;;  %v161_v12 = vld [vmem:[%s733_s13 + $0x48] sm:$0xff]  ;;  %v162_v13 = vld [vmem:[%s733_s13 + $0x50] sm:$0xff]  ;;  %v163_v14 = vld [vmem:[%s733_s13 + $0x58] sm:$0x1] }
  0x16   : > { %211 = vst [vmem:[#allocation2 + $0x58] sm:$0x1] %v163_v14  ;;  %v164_v15 = vld [vmem:[%s733_s13 + $0x60] sm:$0xff]  ;;  %v165_v16 = vld [vmem:[%s733_s13 + $0x68] sm:$0xff]  ;;  %v166_v17 = vld [vmem:[%s733_s13 + $0x70] sm:$0x1]  ;;  %v346_v18 = vmax.f32 %v297_v10, %v158_v7  ;;  %v347_v19 = vmax.f32 %v298_v11, %v159_v8  ;;  %v300_v20 = vmax.f32 %v158_v7, %v161_v12  ;;  %v301_v21 = vmax.f32 %v159_v8, %v162_v13 }
  0x17   : > { %214 = vst [vmem:[#allocation2 + $0x70] sm:$0x1] %v166_v17  ;;  %v167_v22 = vld [vmem:[%s733_s13 + $0x78] sm:$0xff]  ;;  %v168_v23 = vld [vmem:[%s733_s13 + $0x80] sm:$0xff]  ;;  %v169_v24 = vld [vmem:[%s733_s13 + $0x88] sm:$0x1] }
  0x18   : > { %217 = vst [vmem:[#allocation2 + $0x88] sm:$0x1] %v169_v24  ;;  %v170_v25 = vld [vmem:[%s733_s13 + $0x90] sm:$0xff]  ;;  %v171_v26 = vld [vmem:[%s733_s13 + $0x98] sm:$0xff]  ;;  %v172_v27 = vld [vmem:[%s733_s13 + $0xa0] sm:$0x1]  ;;  %v349_v28 = vmax.f32 %v300_v20, %v164_v15  ;;  %v350_v29 = vmax.f32 %v301_v21, %v165_v16  ;;  %v303_v30 = vmax.f32 %v164_v15, %v167_v22  ;;  %v304_v31 = vmax.f32 %v165_v16, %v168_v23 }
  0x19   : > { %386 = vst [vmem:[#allocation3 + $0x1] sm:$0xff] %v346_v18  ;;  %387 = vst [vmem:[#allocation3 + $0x9] sm:$0xff] %v347_v19  ;;  %v173_v32 = vld [vmem:[%s733_s13 + $0xa8] sm:$0xff]  ;;  %v174_v33 = vld [vmem:[%s733_s13 + $0xb0] sm:$0xff] }
  0x1a   : > { %220 = vst [vmem:[#allocation2 + $0xa0] sm:$0x1] %v172_v27  ;;  %v175_v34 = vld [vmem:[%s733_s13 + $0xb8] sm:$0x1]  ;;  %v176_v35 = vld [vmem:[%s733_s13 + $0xc0] sm:$0xff]  ;;  %v177_v36 = vld [vmem:[%s733_s13 + $0xc8] sm:$0xff]  ;;  %v352_v38 = vmax.f32 %v303_v30, %v170_v25  ;;  %v353_v39 = vmax.f32 %v304_v31, %v171_v26  ;;  %v306_v40 = vmax.f32 %v170_v25, %v173_v32  ;;  %v307_v41 = vmax.f32 %v171_v26, %v174_v33 }
  0x1b   : > { %223 = vst [vmem:[#allocation2 + $0xb8] sm:$0x1] %v175_v34  ;;  %v178_v37 = vld [vmem:[%s733_s13 + $0xd0] sm:$0x1]  ;;  %389 = vst [vmem:[#allocation3 + $0x19] sm:$0xff] %v349_v28  ;;  %v179_v42 = vld [vmem:[%s733_s13 + $0xd8] sm:$0xff] }
  0x1c   : > { %390 = vst [vmem:[#allocation3 + $0x21] sm:$0xff] %v350_v29  ;;  %226 = vst [vmem:[#allocation2 + $0xd0] sm:$0x1] %v178_v37  ;;  %v180_v43 = vld [vmem:[%s733_s13 + $0xe0] sm:$0xff]  ;;  %v181_v44 = vld [vmem:[%s733_s13 + $0xe8] sm:$0x1]  ;;  %v355_v48 = vmax.f32 %v306_v40, %v176_v35  ;;  %v356_v49 = vmax.f32 %v307_v41, %v177_v36  ;;  %v309_v50 = vmax.f32 %v176_v35, %v179_v42 }
  0x1d   : > { %229 = vst [vmem:[#allocation2 + $0xe8] sm:$0x1] %v181_v44  ;;  %v182_v45 = vld [vmem:[%s733_s13 + $0xf0] sm:$0xff]  ;;  %v183_v46 = vld [vmem:[%s733_s13 + $0xf8] sm:$0xff]  ;;  %v184_v47 = vld [vmem:[%s733_s13 + $0x100] sm:$0x1]  ;;  %v310_v51 = vmax.f32 %v177_v36, %v180_v43 }
  0x1e   : > { %392 = vst [vmem:[#allocation3 + $0x31] sm:$0xff] %v352_v38  ;;  %393 = vst [vmem:[#allocation3 + $0x39] sm:$0xff] %v353_v39  ;;  %v185_v52 = vld [vmem:[%s733_s13 + $0x108] sm:$0xff]  ;;  %v186_v53 = vld [vmem:[%s733_s13 + $0x110] sm:$0xff]  ;;  %v358_v58 = vmax.f32 %v309_v50, %v182_v45 }
  0x1f   : > { %232 = vst [vmem:[#allocation2 + $0x100] sm:$0x1] %v184_v47  ;;  %v187_v54 = vld [vmem:[%s733_s13 + $0x118] sm:$0x1]  ;;  %v188_v55 = vld [vmem:[%s733_s13 + $0x120] sm:$0xff]  ;;  %v189_v56 = vld [vmem:[%s733_s13 + $0x128] sm:$0xff]  ;;  %v359_v59 = vmax.f32 %v310_v51, %v183_v46  ;;  %v312_v60 = vmax.f32 %v182_v45, %v185_v52  ;;  %v313_v61 = vmax.f32 %v183_v46, %v186_v53 }
  0x20   : > { %235 = vst [vmem:[#allocation2 + $0x118] sm:$0x1] %v187_v54  ;;  %v190_v57 = vld [vmem:[%s733_s13 + $0x130] sm:$0x1]  ;;  %395 = vst [vmem:[#allocation3 + $0x49] sm:$0xff] %v355_v48  ;;  %v191_v62 = vld [vmem:[%s733_s13 + $0x138] sm:$0xff] }
  0x21   : > { %396 = vst [vmem:[#allocation3 + $0x51] sm:$0xff] %v356_v49  ;;  %238 = vst [vmem:[#allocation2 + $0x130] sm:$0x1] %v190_v57  ;;  %v192_v63 = vld [vmem:[%s733_s13 + $0x140] sm:$0xff]  ;;  %v193_v0 = vld [vmem:[%s733_s13 + $0x148] sm:$0x1]  ;;  %v361_v4 = vmax.f32 %v312_v60, %v188_v55  ;;  %v362_v5 = vmax.f32 %v313_v61, %v189_v56  ;;  %v315_v6 = vmax.f32 %v188_v55, %v191_v62 }
  0x22   : > { %241 = vst [vmem:[#allocation2 + $0x148] sm:$0x1] %v193_v0  ;;  %v194_v1 = vld [vmem:[%s733_s13 + $0x150] sm:$0xff]  ;;  %v195_v2 = vld [vmem:[%s733_s13 + $0x158] sm:$0xff]  ;;  %v196_v3 = vld [vmem:[%s733_s13 + $0x160] sm:$0x1]  ;;  %v316_v7 = vmax.f32 %v189_v56, %v192_v63 }
  0x23   : > { %398 = vst [vmem:[#allocation3 + $0x61] sm:$0xff] %v358_v58  ;;  %399 = vst [vmem:[#allocation3 + $0x69] sm:$0xff] %v359_v59  ;;  %v197_v8 = vld [vmem:[%s733_s13 + $0x168] sm:$0xff]  ;;  %v198_v9 = vld [vmem:[%s733_s13 + $0x170] sm:$0xff]  ;;  %v364_v14 = vmax.f32 %v315_v6, %v194_v1 }
  0x24   : > { %244 = vst [vmem:[#allocation2 + $0x160] sm:$0x1] %v196_v3  ;;  %v199_v10 = vld [vmem:[%s733_s13 + $0x178] sm:$0x1]  ;;  %v250_v11 = vld [vmem:[#allocation2 + $0x10] sm:$0x1]  ;;  %v365_v15 = vmax.f32 %v316_v7, %v195_v2  ;;  %v318_v16 = vmax.f32 %v194_v1, %v197_v8  ;;  %v319_v17 = vmax.f32 %v195_v2, %v198_v9 }
  0x25   : > { %247 = vst [vmem:[#allocation2 + $0x178] sm:$0x1] %v199_v10  ;;  %v275_v12 = vld [vmem:[#allocation2 + $0x28] sm:$0x1]  ;;  %v324_v13 = vld [vmem:[#allocation2 + $0x40] sm:$0x1] }
  0x26   : > { %401 = vst [vmem:[#allocation3 + $0x79] sm:$0xff] %v361_v4  ;;  %402 = vst [vmem:[#allocation3 + $0x81] sm:$0xff] %v362_v5  ;;  %v299_v18 = vmax.f32 %v250_v11, %v275_v12  ;;  %v253_v19 = vld [vmem:[#allocation2 + $0x40] sm:$0x1]  ;;  %v278_v20 = vld [vmem:[#allocation2 + $0x58] sm:$0x1] }
  0x27   : > { %v327_v21 = vld [vmem:[#allocation2 + $0x70] sm:$0x1]  ;;  %v302_v22 = vmax.f32 %v253_v19, %v278_v20  ;;  %v281_v24 = vld [vmem:[#allocation2 + $0x88] sm:$0x1]  ;;  %v330_v25 = vld [vmem:[#allocation2 + $0xa0] sm:$0x1] }
  0x28   : > { %v256_v23 = vld [vmem:[#allocation2 + $0x70] sm:$0x1]  ;;  %404 = vst [vmem:[#allocation3 + $0x91] sm:$0xff] %v364_v14  ;;  %405 = vst [vmem:[#allocation3 + $0x99] sm:$0xff] %v365_v15  ;;  %v367_v26 = vmax.f32 %v318_v16, 0.0  ;;  %v368_v27 = vmax.f32 %v319_v17, 0.0  ;;  %v348_v28 = vmax.f32 %v299_v18, %v324_v13 }
  0x29   : > { %v305_v29 = vmax.f32 %v256_v23, %v281_v24  ;;  %v259_v30 = vld [vmem:[#allocation2 + $0xa0] sm:$0x1]  ;;  %v284_v31 = vld [vmem:[#allocation2 + $0xb8] sm:$0x1]  ;;  %v333_v32 = vld [vmem:[#allocation2 + $0xd0] sm:$0x1]  ;;  %v351_v33 = vmax.f32 %v302_v22, %v327_v21 }
  0x2a   : > { %v308_v34 = vmax.f32 %v259_v30, %v284_v31  ;;  %v262_v35 = vld [vmem:[#allocation2 + $0xd0] sm:$0x1]  ;;  %v287_v36 = vld [vmem:[#allocation2 + $0xe8] sm:$0x1]  ;;  %v336_v37 = vld [vmem:[#allocation2 + $0x100] sm:$0x1] }
  0x2b   : > { %407 = vst [vmem:[#allocation3 + $0xa9] sm:$0xff] %v367_v26  ;;  %408 = vst [vmem:[#allocation3 + $0xb1] sm:$0xff] %v368_v27  ;;  %v354_v38 = vmax.f32 %v305_v29, %v330_v25  ;;  %v311_v39 = vmax.f32 %v262_v35, %v287_v36  ;;  %v265_v40 = vld [vmem:[#allocation2 + $0x100] sm:$0x1]  ;;  %v290_v41 = vld [vmem:[#allocation2 + $0x118] sm:$0x1] }
  0x2c   : > { %388 = vst [vmem:[#allocation3 + $0x11] sm:$0x1] %v348_v28  ;;  %v339_v42 = vld [vmem:[#allocation2 + $0x130] sm:$0x1]  ;;  %391 = vst [vmem:[#allocation3 + $0x29] sm:$0x1] %v351_v33  ;;  %v357_v43 = vmax.f32 %v308_v34, %v333_v32  ;;  %v314_v44 = vmax.f32 %v265_v40, %v290_v41 }
  0x2d   : > { %v268_v45 = vld [vmem:[#allocation2 + $0x130] sm:$0x1]  ;;  %v293_v46 = vld [vmem:[#allocation2 + $0x148] sm:$0x1]  ;;  %v342_v47 = vld [vmem:[#allocation2 + $0x160] sm:$0x1]  ;;  %v360_v48 = vmax.f32 %v311_v39, %v336_v37 }
  0x2e   : > { %394 = vst [vmem:[#allocation3 + $0x41] sm:$0x1] %v354_v38  ;;  %v317_v49 = vmax.f32 %v268_v45, %v293_v46  ;;  %v271_v50 = vld [vmem:[#allocation2 + $0x160] sm:$0x1]  ;;  %v296_v51 = vld [vmem:[#allocation2 + $0x178] sm:$0x1]  ;;  %v363_v53 = vmax.f32 %v314_v44, %v339_v42 }
  0x2f   : > { %v345_v52 = vld [vmem:[#allocation2 + $0x190] sm:$0x1]  ;;  %397 = vst [vmem:[#allocation3 + $0x59] sm:$0x1] %v357_v43  ;;  %v320_v54 = vmax.f32 %v271_v50, %v296_v51  ;;  %v410_v55 = vld [vmem:[#allocation3] ss:$2 sm:$0xff] }
  0x30   : > { %v442_v56 = vld [vmem:[#allocation3 + $0x1] ss:$2 sm:$0xff]  ;;  %v490_v57 = vld [vmem:[#allocation3 + $0x2] ss:$2 sm:$0xff]  ;;  %400 = vst [vmem:[#allocation3 + $0x71] sm:$0x1] %v360_v48  ;;  %v366_v58 = vmax.f32 %v317_v49, %v342_v47 }
  0x31   : > { %v473_v59 = vmax.f32 %v410_v55, %v442_v56  ;;  %v412_v60 = vld [vmem:[#allocation3 + $0x10] ss:$2 sm:$0x1]  ;;  %403 = vst [vmem:[#allocation3 + $0x89] sm:$0x1] %v363_v53  ;;  %v369_v61 = vmax.f32 %v320_v54, %v345_v52 }
  0x32   : > { %v492_v62 = vld [vmem:[#allocation3 + $0x12] ss:$2 sm:$0x1]  ;;  %v414_v63 = vld [vmem:[#allocation3 + $0x18] ss:$2 sm:$0xff] }
  0x33   : > { %v446_v0 = vld [vmem:[#allocation3 + $0x19] ss:$2 sm:$0xff]  ;;  %v494_v1 = vld [vmem:[#allocation3 + $0x1a] ss:$2 sm:$0xff]  ;;  %406 = vst [vmem:[#allocation3 + $0xa1] sm:$0x1] %v366_v58  ;;  %v521_v2 = vmax.f32 %v473_v59, %v490_v57 }
  0x34   : > { %v475_v3 = vmax.f32 %v414_v63, %v446_v0  ;;  %v416_v4 = vld [vmem:[#allocation3 + $0x28] ss:$2 sm:$0x1]  ;;  %v496_v5 = vld [vmem:[#allocation3 + $0x2a] ss:$2 sm:$0x1] }
  0x35   : > { %409 = vst [vmem:[#allocation3 + $0xb9] sm:$0x1] %v369_v61  ;;  %v444_v6 = vld [vmem:[#allocation3 + $0x11] ss:$2 sm:$0x1]  ;;  %537 = vst [vmem:[%s789_s17] sm:$0xff] %v521_v2 }
  0x36   : > { %v418_v7 = vld [vmem:[#allocation3 + $0x30] ss:$2 sm:$0xff]  ;;  %v474_v8 = vmax.f32 %v412_v60, %v444_v6  ;;  %v523_v9 = vmax.f32 %v475_v3, %v494_v1  ;;  %v448_v10 = vld [vmem:[#allocation3 + $0x29] ss:$2 sm:$0x1] }
  0x37   : > { %v450_v11 = vld [vmem:[#allocation3 + $0x31] ss:$2 sm:$0xff]  ;;  %v476_v12 = vmax.f32 %v416_v4, %v448_v10  ;;  %v498_v14 = vld [vmem:[#allocation3 + $0x32] ss:$2 sm:$0xff]  ;;  %v458_v33 = vld [vmem:[#allocation3 + $0x61] ss:$2 sm:$0xff] }
  0x38   : > { %v477_v13 = vmax.f32 %v418_v7, %v450_v11  ;;  %v420_v15 = vld [vmem:[#allocation3 + $0x40] ss:$2 sm:$0x1]  ;;  %v522_v16 = vmax.f32 %v474_v8, %v492_v62  ;;  %539 = vst [vmem:[%s789_s17 + $0x10] sm:$0xff] %v523_v9  ;;  %v422_v22 = vld [vmem:[#allocation3 + $0x48] ss:$2 sm:$0xff] }
  0x39   : > { %v452_v17 = vld [vmem:[#allocation3 + $0x41] ss:$2 sm:$0x1]  ;;  %v500_v18 = vld [vmem:[#allocation3 + $0x42] ss:$2 sm:$0x1]  ;;  %v524_v19 = vmax.f32 %v476_v12, %v496_v5 }
  0x3a   : > { %v525_v20 = vmax.f32 %v477_v13, %v498_v14  ;;  %v478_v21 = vmax.f32 %v420_v15, %v452_v17  ;;  %v454_v23 = vld [vmem:[#allocation3 + $0x49] ss:$2 sm:$0xff]  ;;  %v502_v24 = vld [vmem:[#allocation3 + $0x4a] ss:$2 sm:$0xff]  ;;  %538 = vst [vmem:[%s789_s17 + $0x8] sm:$0x1] %v522_v16 }
  0x3b   : > { %v479_v25 = vmax.f32 %v422_v22, %v454_v23  ;;  %v424_v26 = vld [vmem:[#allocation3 + $0x58] ss:$2 sm:$0x1]  ;;  %v456_v27 = vld [vmem:[#allocation3 + $0x59] ss:$2 sm:$0x1] }
  0x3c   : > { %540 = vst [vmem:[%s789_s17 + $0x18] sm:$0x1] %v524_v19  ;;  %541 = vst [vmem:[%s789_s17 + $0x20] sm:$0xff] %v525_v20  ;;  %v526_v28 = vmax.f32 %v478_v21, %v500_v18  ;;  %v480_v29 = vmax.f32 %v424_v26, %v456_v27  ;;  %v504_v30 = vld [vmem:[#allocation3 + $0x5a] ss:$2 sm:$0x1] }
  0x3d   : > { %v426_v31 = vld [vmem:[#allocation3 + $0x60] ss:$2 sm:$0xff]  ;;  %v527_v32 = vmax.f32 %v479_v25, %v502_v24  ;;  %v428_v38 = vld [vmem:[#allocation3 + $0x70] ss:$2 sm:$0x1] }
  0x3e   : > { %v506_v34 = vld [vmem:[#allocation3 + $0x62] ss:$2 sm:$0xff]  ;;  %542 = vst [vmem:[%s789_s17 + $0x28] sm:$0x1] %v526_v28  ;;  %v528_v36 = vmax.f32 %v480_v29, %v504_v30  ;;  %v481_v37 = vmax.f32 %v426_v31, %v458_v33  ;;  %v462_v42 = vld [vmem:[#allocation3 + $0x79] ss:$2 sm:$0xff] }
  0x3f   : > { %v430_v35 = vld [vmem:[#allocation3 + $0x78] ss:$2 sm:$0xff]  ;;  %v460_v39 = vld [vmem:[#allocation3 + $0x71] ss:$2 sm:$0x1]  ;;  %543 = vst [vmem:[%s789_s17 + $0x30] sm:$0xff] %v527_v32 }
  0x40   : > { %v482_v40 = vmax.f32 %v428_v38, %v460_v39  ;;  %v508_v41 = vld [vmem:[#allocation3 + $0x72] ss:$2 sm:$0x1]  ;;  %544 = vst [vmem:[%s789_s17 + $0x38] sm:$0x1] %v528_v36  ;;  %v529_v43 = vmax.f32 %v481_v37, %v506_v34  ;;  %v483_v44 = vmax.f32 %v430_v35, %v462_v42 }
  0x41   : > { %v510_v45 = vld [vmem:[#allocation3 + $0x7a] ss:$2 sm:$0xff]  ;;  %v464_v48 = vld [vmem:[#allocation3 + $0x89] ss:$2 sm:$0x1] }
  0x42   : > { %v432_v46 = vld [vmem:[#allocation3 + $0x88] ss:$2 sm:$0x1]  ;;  %v530_v47 = vmax.f32 %v482_v40, %v508_v41  ;;  %v512_v49 = vld [vmem:[#allocation3 + $0x8a] ss:$2 sm:$0x1]  ;;  %v531_v50 = vmax.f32 %v483_v44, %v510_v45 }
  0x43   : > { %545 = vst [vmem:[%s789_s17 + $0x40] sm:$0xff] %v529_v43  ;;  %v484_v51 = vmax.f32 %v432_v46, %v464_v48  ;;  %v434_v52 = vld [vmem:[#allocation3 + $0x90] ss:$2 sm:$0xff]  ;;  %v466_v53 = vld [vmem:[#allocation3 + $0x91] ss:$2 sm:$0xff] }
  0x44   : > { %v514_v54 = vld [vmem:[#allocation3 + $0x92] ss:$2 sm:$0xff]  ;;  %546 = vst [vmem:[%s789_s17 + $0x48] sm:$0x1] %v530_v47  ;;  %v485_v55 = vmax.f32 %v434_v52, %v466_v53  ;;  %547 = vst [vmem:[%s789_s17 + $0x50] sm:$0xff] %v531_v50 }
  0x45   : > { %v436_v56 = vld [vmem:[#allocation3 + $0xa0] ss:$2 sm:$0x1]  ;;  %v468_v57 = vld [vmem:[#allocation3 + $0xa1] ss:$2 sm:$0x1]  ;;  %v532_v58 = vmax.f32 %v484_v51, %v512_v49 }
  0x46   : > { %v486_v59 = vmax.f32 %v436_v56, %v468_v57  ;;  %v516_v60 = vld [vmem:[#allocation3 + $0xa2] ss:$2 sm:$0x1]  ;;  %v438_v61 = vld [vmem:[#allocation3 + $0xa8] ss:$2 sm:$0xff]  ;;  %v533_v62 = vmax.f32 %v485_v55, %v514_v54 }
  0x47   : > { %v470_v63 = vld [vmem:[#allocation3 + $0xa9] ss:$2 sm:$0xff]  ;;  %v518_v0 = vld [vmem:[#allocation3 + $0xaa] ss:$2 sm:$0xff]  ;;  %548 = vst [vmem:[%s789_s17 + $0x58] sm:$0x1] %v532_v58 }
  0x48   : > { %v534_v1 = vmax.f32 %v486_v59, %v516_v60  ;;  %v487_v2 = vmax.f32 %v438_v61, %v470_v63  ;;  %v440_v3 = vld [vmem:[#allocation3 + $0xb8] ss:$2 sm:$0x1]  ;;  %v472_v4 = vld [vmem:[#allocation3 + $0xb9] ss:$2 sm:$0x1] }
  0x49   : > { %549 = vst [vmem:[%s789_s17 + $0x60] sm:$0xff] %v533_v62  ;;  %v488_v5 = vmax.f32 %v440_v3, %v472_v4  ;;  %v520_v6 = vld [vmem:[#allocation3 + $0xba] ss:$2 sm:$0x1] }
  0x4a   : > { %550 = vst [vmem:[%s789_s17 + $0x68] sm:$0x1] %v534_v1  ;;  %v535_v7 = vmax.f32 %v487_v2, %v518_v0 }
  0x4b   : > { %v536_v8 = vmax.f32 %v488_v5, %v520_v6 }
  0x4c   : > { %551 = vst [vmem:[%s789_s17 + $0x70] sm:$0xff] %v535_v7 }
  0x4d   : > { %552 = vst [vmem:[%s789_s17 + $0x78] sm:$0x1] %v536_v8 }
  0x4e PF: > { %s11_s8 = sadd.s32 1, %s695_s8   ;;  %s818_s6 = smov %s691_s7 }
  0x4f   : > { %p8_p5 = scmp.ge.s32.totalorder %s11_s8, 4   ;;  %s819_s7 = smov %s821_s9 }
  0x51   :  { %10 = sbr.rel (!%p8_p5) target bundleno = 2 (0x2), region = 104 }

</bundles_post_ra>
